<compile_context>
chip_gen: v5e
topology: v5e:2x2
jax: 0.10.0
libtpu: 0.0.40
codegen_flags: <defaults>
</compile_context>

<pallas_src>
import functools

import jax
import jax.numpy as jnp
from jax import lax
from jax.experimental import pallas as pl
from jax.experimental.pallas import tpu as pltpu


def _round_up(x, m):
    return ((x + m - 1) // m) * m


_VMEM_LIMIT = 48 * 1024 * 1024   # > v5e/v6e default scoped VMEM, < v7x physical


# --------------------------------------------------------------------------
# adaLN modulation: mod = SiLU(vec) @ W_mod + b_mod   (mod = [shift | scale])
# --------------------------------------------------------------------------
def _adaln_kernel(vec_ref, w_ref, b_ref, mod_ref):
    v = vec_ref[...].astype(jnp.float32)
    s = v * (1.0 / (1.0 + jnp.exp(-v)))                # SiLU = v * sigmoid(v)
    y = jnp.dot(s.astype(w_ref.dtype), w_ref[...],     # matmul in weight dtype
                preferred_element_type=jnp.float32)
    mod_ref[...] = (y + b_ref[...].astype(jnp.float32)).astype(mod_ref.dtype)


def _adaln_modulation(vec, w_mod, b_mod, *, tile_n=1024):
    b, h = vec.shape
    n = w_mod.shape[1]                                  # 2 * hidden
    if n <= tile_n:
        tn, npad = n, n
    else:
        tn = max(128, (tile_n // 128) * 128)
        npad = _round_up(n, tn)
    if npad != n:
        w_mod = jnp.pad(w_mod, ((0, 0), (0, npad - n)))
        b_mod = jnp.pad(b_mod, ((0, npad - n),))

    mod = pl.pallas_call(
        _adaln_kernel,
        out_shape=jax.ShapeDtypeStruct((b, npad), vec.dtype),
        grid_spec=pltpu.PrefetchScalarGridSpec(
            num_scalar_prefetch=0,
            grid=(npad // tn,),
            in_specs=[
                pl.BlockSpec((b, h), lambda j: (0, 0)),      # vec (resident)
                pl.BlockSpec((h, tn), lambda j: (0, j)),     # W_mod column tile
                pl.BlockSpec((1, tn), lambda j: (0, j)),     # b_mod column tile
            ],
            out_specs=pl.BlockSpec((b, tn), lambda j: (0, j)),
        ),
        compiler_params=pltpu.CompilerParams(
            dimension_semantics=("parallel",),
            vmem_limit_bytes=_VMEM_LIMIT),
    )(vec, w_mod, b_mod.reshape(1, -1))
    return mod[:, :n] if npad != n else mod


# --------------------------------------------------------------------------
# Fused LayerNorm (no affine) + adaLN modulate + output projection
# --------------------------------------------------------------------------
def _last_layer_kernel(x_ref, mod_ref, w_ref, b_ref, o_ref, *, eps):
    xf = x_ref[0].astype(jnp.float32)                   # (tile_l, H)
    mu = jnp.mean(xf, axis=-1, keepdims=True)
    # single-pass variance (f32; fine for LN-scale activations)
    var = jnp.mean(xf * xf, axis=-1, keepdims=True) - mu * mu
    inv = lax.rsqrt(var + eps)

    m = mod_ref[0].astype(jnp.float32)                  # (2, H): [shift; scale]
    sh = m[0:1, :]                                      # (1, H)
    sc1 = 1.0 + m[1:2, :]                               # (1, H)  (1 + scale)

    xm = ((xf - mu) * inv) * sc1 + sh                   # LN + adaLN modulation

    # Projection on the MXU in the *weight* dtype (bf16 fast path if bf16).
    y = jnp.dot(xm.astype(w_ref.dtype), w_ref[...],
                preferred_element_type=jnp.float32)
    o_ref[0] = (y + b_ref[...].astype(jnp.float32)).astype(o_ref.dtype)


def last_layer(x, vec, w_mod, b_mod, w_lin, b_lin, *, eps=1e-6,
               tile_l=512, tile_n=512):
    """LastLayer.forward.

    x:     (B, L, H)          tokens
    vec:   (B, H)             conditioning vector
    w_mod: (H, 2H), b_mod: (2H,)   adaLN_modulation Linear (stored (in, out))
    w_lin: (H, N),  b_lin: (N,)    output projection       (stored (in, out))
    returns (B, L, N)
    """
    B, L, H = x.shape
    N = w_lin.shape[1]
    out_dtype = x.dtype

    # Tiny adaLN matmul; shift/scale stay packed as (B, 2, H) (no HBM slicing).
    mod = _adaln_modulation(vec, w_mod, b_mod)
    mod3 = mod.reshape(B, 2, H)

    # Output-column tiling: ALWAYS a multiple of 128 (lane-dense, unmasked vst).
    if N <= tile_n:
        tn = _round_up(N, 128)
        Np = tn
    else:
        tn = max(128, (tile_n // 128) * 128)
        Np = _round_up(N, tn)

    # Token (row) tiling: big blocks; prefer a multiple-of-8 divisor of L so x
    # never needs an HBM-side pad copy.
    if L <= tile_l:
        tl, Lp = L, L
    else:
        base = max(8, (tile_l // 8) * 8)
        tl = 0
        for cand in range(base, 7, -8):
            if L % cand == 0:
                tl = cand
                break
        if tl == 0:
            tl = base
        Lp = _round_up(L, tl)

    # v7x has 2 TensorCores: make sure some "parallel" axis has extent >= 2.
    if B == 1 and (Np // tn) == 1 and (Lp // tl) == 1 and L >= 16:
        tl = _round_up((L + 1) // 2, 8)
        Lp = _round_up(L, tl)

    xp = x if Lp == L else jnp.pad(x, ((0, 0), (0, Lp - L), (0, 0)))
    wp = w_lin if Np == N else jnp.pad(w_lin, ((0, 0), (0, Np - N)))
    bp = b_lin if Np == N else jnp.pad(b_lin, ((0, Np - N),))

    # Weight tile outermost -> stays resident while token tiles stream.
    grid = (Np // tn, B, Lp // tl)

    out = pl.pallas_call(
        functools.partial(_last_layer_kernel, eps=eps),
        out_shape=jax.ShapeDtypeStruct((B, Lp, Np), out_dtype),
        grid_spec=pltpu.PrefetchScalarGridSpec(
            num_scalar_prefetch=0,
            grid=grid,
            in_specs=[
                pl.BlockSpec((1, tl, H), lambda n, b, i: (b, i, 0)),   # x
                pl.BlockSpec((1, 2, H), lambda n, b, i: (b, 0, 0)),    # shift|scale
                pl.BlockSpec((H, tn), lambda n, b, i: (0, n)),         # W_lin
                pl.BlockSpec((1, tn), lambda n, b, i: (0, n)),         # b_lin
            ],
            out_specs=pl.BlockSpec((1, tl, tn), lambda n, b, i: (b, i, n)),
        ),
        compiler_params=pltpu.CompilerParams(
            dimension_semantics=("parallel", "parallel", "parallel"),
            vmem_limit_bytes=_VMEM_LIMIT),
    )(xp, mod3, wp, bp.reshape(1, -1))

    if Lp != L or Np != N:
        out = out[:, :L, :N]
    return out


# --------------------------------------------------------------------------
# Pure-JAX reference (mirrors the PyTorch module)
# --------------------------------------------------------------------------
def _last_layer_ref(x, vec, w_mod, b_mod, w_lin, b_lin, eps=1e-6):
    s = vec / (1.0 + jnp.exp(-vec))                    # SiLU
    mod = s @ w_mod + b_mod
    H = x.shape[-1]
    shift, scale = mod[:, :H], mod[:, H:]
    mu = jnp.mean(x, axis=-1, keepdims=True)
    var = jnp.mean((x - mu) ** 2, axis=-1, keepdims=True)
    xn = (x - mu) * lax.rsqrt(var + eps)
    xm = (1.0 + scale[:, None, :]) * xn + shift[:, None, :]
    return xm @ w_lin + b_lin


if __name__ == "__main__":
    # Small shapes consistent with LastLayer: hidden=32, patch=2, out_ch=4.
    hidden, patch, out_ch = 32, 2, 4
    B, L = 2, 16
    N = patch * patch * out_ch

    key = jax.random.PRNGKey(0)
    kx, kv, k1, k2, k3, k4 = jax.random.split(key, 6)

    x = jax.random.normal(kx, (B, L, hidden), dtype=jnp.float32)
    vec = jax.random.normal(kv, (B, hidden), dtype=jnp.float32)

    # Parameters stored as (in, out), i.e. already transposed vs torch Linear.
    w_mod = jax.random.normal(k1, (hidden, 2 * hidden), jnp.float32) * 0.02
    b_mod = jax.random.normal(k2, (2 * hidden,), jnp.float32) * 0.02
    w_lin = jax.random.normal(k3, (hidden, N), jnp.float32) * 0.02
    b_lin = jax.random.normal(k4, (N,), jnp.float32) * 0.02

    out = last_layer(x, vec, w_mod, b_mod, w_lin, b_lin)
    jax.block_until_ready(out)

    ref = _last_layer_ref(x, vec, w_mod, b_mod, w_lin, b_lin)
    assert out.shape == (B, L, N) and out.dtype == x.dtype
    assert jnp.allclose(out, ref, atol=2e-2, rtol=2e-2), float(
        jnp.max(jnp.abs(out - ref)))

    print("KERNEL_OK")
</pallas_src>

<mosaic_0001>
module attributes {stable_mosaic.version = 11 : i64} {
  func.func @_adaln_kernel(%arg0: i32, %arg1: memref<2x32xf32, #tpu.memory_space<vmem>>, %arg2: memref<32x64xf32, #tpu.memory_space<vmem>>, %arg3: memref<1x64xf32, #tpu.memory_space<vmem>>, %arg4: memref<2x64xf32, #tpu.memory_space<vmem>>) attributes {dimension_semantics = [#tpu.dimension_semantics<parallel>], iteration_bounds = array<i64: 1>, scalar_prefetch = 0 : i64, scratch_operands = 0 : i64, tpu.core_type = #tpu.core_type<tc>, window_params = [{pipeline_mode = #tpu.pipeline_mode<synchronous>, transform_indices = @transform_0, window_bounds = array<i64: 2, 32>}, {transform_indices = @transform_1, window_bounds = array<i64: 32, 64>}, {transform_indices = @transform_2, window_bounds = array<i64: 1, 64>}, {transform_indices = @transform_3, window_bounds = array<i64: 2, 64>}]} {
    %c0 = arith.constant 0 : index
    %c0_0 = arith.constant 0 : index
    %0 = vector.load %arg1[%c0, %c0_0] : memref<2x32xf32, #tpu.memory_space<vmem>>, vector<2x32xf32>
    %cst = arith.constant 0.000000e+00 : f32
    %1 = vector.broadcast %cst : f32 to vector<2x32xf32>
    %2 = arith.subf %1, %0 : vector<2x32xf32>
    %3 = math.exp %2 : vector<2x32xf32>
    %cst_1 = arith.constant 1.000000e+00 : f32
    %4 = vector.broadcast %cst_1 : f32 to vector<2x32xf32>
    %5 = arith.addf %4, %3 : vector<2x32xf32>
    %cst_2 = arith.constant 1.000000e+00 : f32
    %6 = vector.broadcast %cst_2 : f32 to vector<2x32xf32>
    %7 = arith.divf %6, %5 : vector<2x32xf32>
    %8 = arith.mulf %0, %7 : vector<2x32xf32>
    %c0_3 = arith.constant 0 : index
    %c0_4 = arith.constant 0 : index
    %9 = vector.load %arg2[%c0_3, %c0_4] : memref<32x64xf32, #tpu.memory_space<vmem>>, vector<32x64xf32>
    %cst_5 = arith.constant dense<0.000000e+00> : vector<2x64xf32>
    %10 = tpu.matmul %8, %9, %cst_5 {dimension_numbers = #tpu.dot_dimension_numbers<[1], [0], [0], [1], [0, 0, 1, 1], [], []>} : vector<2x32xf32>, vector<32x64xf32>, vector<2x64xf32> -> vector<2x64xf32>
    %c0_6 = arith.constant 0 : index
    %c0_7 = arith.constant 0 : index
    %11 = vector.load %arg3[%c0_6, %c0_7] : memref<1x64xf32, #tpu.memory_space<vmem>>, vector<1x64xf32>
    %12 = vector.broadcast %11 : vector<1x64xf32> to vector<2x64xf32>
    %13 = arith.addf %10, %12 : vector<2x64xf32>
    %c0_8 = arith.constant 0 : index
    %c0_9 = arith.constant 0 : index
    %14 = vector.load %arg4[%c0_8, %c0_9] : memref<2x64xf32, #tpu.memory_space<vmem>>, vector<2x64xf32>
    tpu.vector_store %arg4[%c0_8, %c0_9], %13 {strides = array<i32>} : memref<2x64xf32, #tpu.memory_space<vmem>>, vector<2x64xf32>,
    return
  }
  func.func @transform_0(%arg0: i32) -> (i32, i32) {
    %c0_i32 = arith.constant 0 : i32
    %c0_i32_0 = arith.constant 0 : i32
    %c0_i32_1 = arith.constant 0 : i32
    return %c0_i32, %c0_i32_0 : i32, i32
  }
  func.func @transform_1(%arg0: i32) -> (i32, i32) {
    %c0_i32 = arith.constant 0 : i32
    %c0_i32_0 = arith.constant 0 : i32
    return %c0_i32, %arg0 : i32, i32
  }
  func.func @transform_2(%arg0: i32) -> (i32, i32) {
    %c0_i32 = arith.constant 0 : i32
    %c0_i32_0 = arith.constant 0 : i32
    return %c0_i32, %arg0 : i32, i32
  }
  func.func @transform_3(%arg0: i32) -> (i32, i32) {
    %c0_i32 = arith.constant 0 : i32
    %c0_i32_0 = arith.constant 0 : i32
    return %c0_i32, %arg0 : i32, i32
  }
}

</mosaic_0001>

<bundles_post_ra>
// kernel: tpu_custom_call.1
= control target key start
LH: loop header
LB: loop body
LE: loop exit
PB: predicated region body
PF: predicated region fallthrough
CT: control target
= control target key end

     0   :  { %8 = vsyncpa [#allocation3], 0  ;;  %s244_s0 = inlined_call_operand.hbm [shape: f32[2,32], index: 0, kind: input, shape index: {}]   ;;  %s245_s1 = inlined_call_operand.hbm [shape: f32[32,64], index: 1, kind: input, shape index: {}]   ;;  %s246_s2 = inlined_call_operand.vmem [shape: f32[1,64], index: 2, kind: input, shape index: {}]   ;;  %s247_s3 = inlined_call_operand.hbm [shape: f32[2,64], index: 3, kind: output, shape index: {}]  }
   0x1   :  { %9 = vsyncpa [#allocation6], 0 }
   0x2   :  { %10 = vsyncpa [#allocation4], 0  ;;  %s16_s14 = sshll.u32 %s244_s0, 4  ;;  %s207_s15 = smov [#allocation2]   ;;  %s17_s14 = int_to_ptr.hbm [resolvable:$true] %s16_s14 }
   0x3   :  { %s18_s16 = sshll.u32 %s207_s15, 4  ;;  %s26_s19 = sshll.u32 %s245_s1, 4  ;;  %s19_s16 = int_to_ptr.vmem [resolvable:$true] %s18_s16  ;;  %s27_s19 = int_to_ptr.hbm [resolvable:$true] %s26_s19 }
   0x4   :  { %21 = dma.hbm_to_vmem [thread:$0]  %s17_s14, 32, %s19_s16, [#allocation3]  }
   0x5   :  { %s208_s20 = smov [#allocation5]   ;;  %s209_s22 = smov 128  }
   0x6   :  { %s28_s21 = sshll.u32 %s208_s20, 4  ;;  %s210_s23 = smov 8   ;;  %s29_s21 = int_to_ptr.vmem [resolvable:$true] %s28_s21 }
   0x7   :  { %34 = dma.hbm_to_vmem [thread:$0]  %s27_s19, 512, %s29_s21, [#allocation6], %s209_s22, %s209_s22, %s210_s23  }
   0x8   :  { %201 = dma.done.wait [#allocation3], 32  }
   0x9   :  { %202 = vsyncadd [#allocation3], 4294967264 }
   0xa   :  { %203 = dma.done.wait [#allocation6], 512  }
   0xb   :  { %204 = vsyncadd [#allocation6], 4294966784  ;;  %v69_v0 = vld [vmem:[#allocation5 + $0x18] sm:$0xff]  ;;  %v68_v1 = vld [vmem:[#allocation5 + $0x10] sm:$0xff]  ;;  %vm74_vm4 = vcmask 261120   ;;  %s211_s24 = smov [#allocation7]  }
   0xc   :  { %90 = vmatpush.msra.mxu0 %v69_v0  ;;  %v45_v2 = vld [vmem:[#allocation2] sm:$0x3]  ;;  %v67_v3 = vld [vmem:[#allocation5 + $0x8] sm:$0xff]  ;;  %v66_v5 = vld [vmem:[#allocation5] sm:$0xff]  ;;  %s105_s25 = sshll.u32 %s211_s24, 4  ;;  %s107_s28 = sshll.u32 %s247_s3, 4  ;;  %s106_s25 = int_to_ptr.vmem [resolvable:$true] %s105_s25  ;;  %s108_s28 = int_to_ptr.hbm [resolvable:$true] %s107_s28 }
   0xd   :  { %v46_v4 = vsub.f32 0.0, %v45_v2  ;;  %v124_v20 = vld [vmem:[%s246_s2] ss:$0 sm:$0xff]  ;;  %vm98_vm5 = vcmask 517120  }
   0xe   :  { %91 = vmatpush.msra.mxu0 %v68_v1 }
   0xf   :  { %v47_v6 = vmul.f32 1.442695, %v46_v4 }
  0x10   :  { %92 = vmatpush.msra.mxu0 %v67_v3 }
  0x11   :  { %125 = vpow2.f32 %v47_v6 }
  0x12   :  { %93 = vmatpush.msra.mxu0 %v66_v5 }
  0x17   :  { %v126_v7 = vpop.eup %125 }
  0x18   :  { %v49_v8 = vadd.f32 1.0, %v126_v7 }
  0x1a   :  { %127 = vrcp.f32 %v49_v8  ;;  %v61_v11 = vand.u32 2147483648, %v49_v8  ;;  %vm55_vm0 = vweird.f32 %v49_v8  ;;  %v59_v13 = vand.u32 2147483647, %v49_v8 }
  0x1c   :  { %v62_v15 = vor.u32 1.1754944e-38, %v61_v11  ;;  %vm60_vm3 = vcmp.eq.f32.partialorder %v59_v13, 8.507059e+37 }
  0x20   :  { %v128_v9 = vpop.eup %127 }
  0x21   :  { %v51_v10 = vmul.f32 %v128_v9, %v49_v8  ;;  %vm56_vm1 = vweird.f32 %v128_v9 }
  0x22   :  { %vm57_vm2 = vmor %vm55_vm0, %vm56_vm1 }
  0x23   :  { %v52_v12 = vsub.f32 1.0, %v51_v10 }
  0x25   :  { %v53_v14 = vmul.f32 %v128_v9, %v52_v12 }
  0x27   :  { %v54_v16 = vadd.f32 %v128_v9, %v53_v14 }
  0x29   :  { %v58_v17 = vsel %vm57_vm2, %v128_v9, %v54_v16 }
  0x2a   :  { %v63_v18 = vsel %vm60_vm3, %v62_v15, %v58_v17 }
  0x2b   :  { %v65_v19 = vmul.f32 %v63_v18, %v45_v2 }
  0x2d   :  { %118 = vmatmul.msk.f32.vlgmr.msra.gmra.mxu0 %vm74_vm4, %v65_v19 }
  0xaa   :  { %v95_v21 = vpop.f32.mrf.mxu0 }
  0xab   :  { %v96_v22 = vadd.f32 %v124_v20, %v95_v21 }
  0xad   :  { %99 = vst.msk [vmem:[#allocation7] sm:$0x3] %vm98_vm5, %v96_v22 }
  0xae   :  { %110 = dma.vmem_to_hbm [thread:$0]  %s106_s25, 32, %s108_s28, [#allocation4]  }
  0xaf   :  { %205 = dma.done.wait [#allocation4], 32  }
  0xb0   :  { %206 = vsyncadd [#allocation4], 4294967264 }
  0xb1   :  { %115 = vsyncpa [#allocation3], 1 }
  0xb2   :  { %116 = vsyncpa [#allocation6], 1 }
  0xb3   :  { %117 = vsyncpa [#allocation4], 1 }

</bundles_post_ra>
